<compile_context>
chip_gen: v7x
topology: tpu7x:2x2x1
jax: 0.10.0
libtpu: 0.0.40
codegen_flags: <defaults>
</compile_context>

<pallas_src>
import functools

import jax
import jax.numpy as jnp
from jax import lax
from jax.experimental import pallas as pl
from jax.experimental.pallas import tpu as pltpu


def _focal_ce_kernel(logit_ref, target_ref, out_ref, *, hw, tile, chunk, ragged):
    """One grid step: a (C, tile) pixel slab of one image.

    Streams logits AND the dense target (argmax fused in-kernel) and
    accumulates per-lane partial cross-entropy sums into out_ref (1, 1, chunk).
    """
    j = pl.program_id(1)

    @pl.when(j == 0)
    def _init():
        out_ref[...] = jnp.zeros_like(out_ref)

    c = logit_ref.shape[0]
    nchunks = tile // chunk

    # Hoisted iotas (JAX does not CSE broadcast_in_dim inside the unrolled loop).
    cls_iota = lax.broadcasted_iota(jnp.int32, (c, chunk), 0)       # (C, W)
    lane_iota = lax.broadcasted_iota(jnp.int32, (1, chunk), 1)      # (1, W)
    base_col = j * tile

    acc = None
    for k in range(nchunks):                       # static unroll, lane-aligned slices
        lo = k * chunk
        x = logit_ref[:, lo:lo + chunk].astype(jnp.float32)         # (C, W)
        t = target_ref[:, lo:lo + chunk]                            # (C, W)

        # Fused argmax over the class axis (first max index, like torch/jnp).
        tmax = jnp.max(t, axis=0, keepdims=True)                    # (1, W)
        lbl = jnp.min(jnp.where(t == tmax, cls_iota, c),
                      axis=0, keepdims=True)                        # (1, W) int32

        # Numerically stable per-pixel CE: logsumexp - selected logit.
        m = jnp.max(x, axis=0, keepdims=True)                       # (1, W)
        lse = m + jnp.log(jnp.sum(jnp.exp(x - m), axis=0, keepdims=True))
        sel = jnp.sum(jnp.where(cls_iota == lbl, x, 0.0),
                      axis=0, keepdims=True)                        # (1, W)
        ce = lse - sel                                              # (1, W)

        if ragged:  # mask the out-of-range tail of the last pixel tile
            ce = jnp.where(lane_iota + (base_col + lo) < hw, ce, 0.0)

        acc = ce if acc is None else acc + ce

    out_ref[...] += acc[None]                      # (1, 1, chunk) per-batch partials


def focal_loss(logit, target, *, alpha=0.25, gamma=2.0, batch_average=True,
               target_step_bytes=4 << 20, chunk_bytes=1 << 20):
    """logit, target: (N, C, ...) arrays; returns the scalar focal loss."""
    n, c = logit.shape[0], logit.shape[1]
    hw = 1
    for d in logit.shape[2:]:
        hw *= d

    # Free reshapes only: keep the class dim second, flatten spatial dims.
    x = logit.reshape(n, c, hw)
    t = target.reshape(n, c, hw)

    it_l = jnp.dtype(logit.dtype).itemsize
    it_t = jnp.dtype(target.dtype).itemsize
    stream_bpl = c * (it_l + it_t)          # streamed HBM bytes per pixel (lane)

    # Per-generation VMEM budget (v7x has 64 MiB/TC vs 128 MiB on v5e/v6e).
    try:
        vmem_cap = int(pltpu.get_tpu_info().vmem_capacity_bytes)
    except Exception:
        vmem_cap = 64 * 1024 * 1024         # conservative fallback = v7x per-TC
    vmem_budget = min((vmem_cap * 2) // 5, 40 * 1024 * 1024)

    # Compute-chunk width: bounds f32 intermediates to ~chunk_bytes and keeps
    # the cross-step accumulator / output block narrow.
    chunk = max(128, min(2048, ((chunk_bytes // (c * 4)) // 128) * 128))

    if hw < 128:
        tile = chunk = hw                   # single full-extent tile
    else:
        hw_pad = ((hw + 127) // 128) * 128
        fixed = 8 * c * chunk * 4 + 16 * chunk * 4 + (1 << 16)
        tile_vmem = max(
            128, (max(vmem_budget - fixed, 0) // (2 * stream_bpl) // 128) * 128)
        tile_tgt = max(128, (target_step_bytes // stream_bpl // 128) * 128)
        tile = min(max(tile_tgt, 512), tile_vmem, hw_pad)
        tile = max(tile, 128)
        if tile >= chunk:
            tile = (tile // chunk) * chunk  # chunk loop needs tile % chunk == 0
        else:
            chunk = tile

    num_tiles = pl.cdiv(hw, tile)
    ragged = (hw % tile) != 0               # only then emit the in-kernel lane mask

    fixed = 8 * c * chunk * 4 + 16 * chunk * 4 + (1 << 16)
    vmem_need = 2 * tile * stream_bpl + fixed       # double-buffered inputs + interm.
    vmem_limit = int(min(max(2 * vmem_need, 32 * 1024 * 1024), (vmem_cap * 7) // 10))

    kern = functools.partial(_focal_ce_kernel, hw=hw, tile=tile, chunk=chunk,
                             ragged=ragged)

    # TODO(synk): if N == 1, split the pixel-tile axis into a leading size-2
    # 'parallel' axis so v7x's second TensorCore is still used.
    partials = pl.pallas_call(
        kern,
        out_shape=jax.ShapeDtypeStruct((n, 1, chunk), jnp.float32),
        grid_spec=pltpu.PrefetchScalarGridSpec(
            num_scalar_prefetch=0,
            grid=(n, num_tiles),
            in_specs=[
                pl.BlockSpec((pl.Squeezed(), c, tile), lambda b, j: (b, 0, j)),
                pl.BlockSpec((pl.Squeezed(), c, tile), lambda b, j: (b, 0, j)),
            ],
            out_specs=pl.BlockSpec((1, 1, chunk), lambda b, j: (b, 0, 0)),
        ),
        compiler_params=pltpu.CompilerParams(
            dimension_semantics=("parallel", "arbitrary"),
            vmem_limit_bytes=vmem_limit),
    )(x, t)

    # Tiny finalize in XLA (keeps the batch grid axis 'parallel' for megacore).
    ce_mean = jnp.sum(partials) / jnp.float32(n * hw)
    logpt = -ce_mean
    pt = jnp.exp(logpt)
    logpt = logpt * jnp.float32(alpha)
    q = jnp.maximum(1.0 - pt, 0.0)          # clamp: pt can round slightly above 1
    qg = q * q if float(gamma) == 2.0 else q ** jnp.float32(gamma)
    loss = -qg * logpt
    if batch_average:
        loss = loss / n
    return loss


def _ref_focal(logit, target, alpha=0.25, gamma=2.0, batch_average=True):
    """Pure-JAX reference matching the PyTorch module."""
    n = logit.shape[0]
    labels = jnp.argmax(target, axis=1)                        # (N, H, W)
    logp = jax.nn.log_softmax(logit, axis=1)                   # (N, C, H, W)
    sel = jnp.take_along_axis(logp, labels[:, None], axis=1)[:, 0]
    logpt = jnp.mean(sel)                                      # = -CE
    pt = jnp.exp(logpt)
    logpt = logpt * alpha
    loss = -(1.0 - pt) ** gamma * logpt
    if batch_average:
        loss = loss / n
    return loss


if __name__ == "__main__":
    # FocalLoss has no learnable parameters; only hyperparameters below.
    ALPHA, GAMMA = 0.25, 2.0

    key = jax.random.PRNGKey(0)
    k1, k2 = jax.random.split(key)
    N, C, H, W = 2, 4, 16, 16                      # NCHW, as in PyTorch
    logit = jax.random.normal(k1, (N, C, H, W), dtype=jnp.float32)
    labels = jax.random.randint(k2, (N, H, W), 0, C)
    # dense one-hot target with class dim at dim=1 (what .argmax(dim=1) expects)
    target = jnp.moveaxis(jax.nn.one_hot(labels, C, dtype=jnp.float32), -1, 1)

    loss = focal_loss(logit, target, alpha=ALPHA, gamma=GAMMA)
    loss = jax.block_until_ready(loss)

    ref = _ref_focal(logit, target, alpha=ALPHA, gamma=GAMMA)
    assert jnp.allclose(loss, ref, rtol=1e-5, atol=1e-6), (loss, ref)

    print("KERNEL_OK")
</pallas_src>

<mosaic_0001>
module attributes {stable_mosaic.version = 11 : i64} {
  func.func @_focal_ce_kernel(%arg0: i32, %arg1: i32, %arg2: memref<1x4x256xf32, #tpu.memory_space<vmem>>, %arg3: memref<1x4x256xf32, #tpu.memory_space<vmem>>, %arg4: memref<1x1x256xf32, #tpu.memory_space<vmem>>) attributes {dimension_semantics = [#tpu.dimension_semantics<parallel>, #tpu.dimension_semantics<arbitrary>], iteration_bounds = array<i64: 2, 1>, scalar_prefetch = 0 : i64, scratch_operands = 0 : i64, tpu.core_type = #tpu.core_type<tc>, window_params = [{transform_indices = @transform_0, window_bounds = array<i64: 1, 4, 256>}, {transform_indices = @transform_1, window_bounds = array<i64: 1, 4, 256>}, {transform_indices = @transform_2, window_bounds = array<i64: 1, 1, 256>}]} {
    %c0_i32 = arith.constant 0 : i32
    %0 = arith.cmpi eq, %arg1, %c0_i32 : i32
    %1 = arith.extui %0 : i1 to i32
    %c0_i32_0 = arith.constant 0 : i32
    %2 = arith.cmpi ne, %1, %c0_i32_0 : i32
    scf.if %2 {
      %cst_17 = arith.constant 0.000000e+00 : f32
      %36 = vector.broadcast %cst_17 : f32 to vector<1x1x256xf32>
      %c0_18 = arith.constant 0 : index
      %c0_19 = arith.constant 0 : index
      %c0_20 = arith.constant 0 : index
      %37 = vector.load %arg4[%c0_18, %c0_19, %c0_20] : memref<1x1x256xf32, #tpu.memory_space<vmem>>, vector<1x1x256xf32>
      tpu.vector_store %arg4[%c0_18, %c0_19, %c0_20], %36 {strides = array<i32>} : memref<1x1x256xf32, #tpu.memory_space<vmem>>, vector<1x1x256xf32>,
    } else {
    }
    %3 = tpu.iota {dimensions = array<i32: 0>} : vector<4x256xi32>
    %c0 = arith.constant 0 : index
    %c0_1 = arith.constant 0 : index
    %c0_2 = arith.constant 0 : index
    %4 = vector.load %arg2[%c0, %c0_1, %c0_2] : memref<1x4x256xf32, #tpu.memory_space<vmem>>, vector<1x4x256xf32>
    %5 = vector.shape_cast %4 : vector<1x4x256xf32> to vector<4x256xf32>
    %c0_3 = arith.constant 0 : index
    %c0_4 = arith.constant 0 : index
    %c0_5 = arith.constant 0 : index
    %6 = vector.load %arg3[%c0_3, %c0_4, %c0_5] : memref<1x4x256xf32, #tpu.memory_space<vmem>>, vector<1x4x256xf32>
    %7 = vector.shape_cast %6 : vector<1x4x256xf32> to vector<4x256xf32>
    %cst = arith.constant dense<0xFF800000> : vector<256xf32>
    %8 = vector.multi_reduction <maximumf>, %7, %cst [0] : vector<4x256xf32> to vector<256xf32>
    %9 = vector.shape_cast %8 : vector<256xf32> to vector<1x256xf32>
    %10 = vector.broadcast %9 : vector<1x256xf32> to vector<4x256xf32>
    %11 = arith.cmpf oeq, %7, %10 : vector<4x256xf32>
    %c4_i32 = arith.constant 4 : i32
    %12 = vector.broadcast %c4_i32 : i32 to vector<4x256xi32>
    %13 = arith.select %11, %3, %12 : vector<4x256xi1>, vector<4x256xi32>
    %cst_6 = arith.constant dense<2147483647> : vector<256xi32>
    %14 = vector.multi_reduction <minsi>, %13, %cst_6 [0] : vector<4x256xi32> to vector<256xi32>
    %15 = vector.shape_cast %14 : vector<256xi32> to vector<1x256xi32>
    %cst_7 = arith.constant dense<0xFF800000> : vector<256xf32>
    %16 = vector.multi_reduction <maximumf>, %5, %cst_7 [0] : vector<4x256xf32> to vector<256xf32>
    %17 = vector.shape_cast %16 : vector<256xf32> to vector<1x256xf32>
    %18 = vector.broadcast %17 : vector<1x256xf32> to vector<4x256xf32>
    %19 = arith.subf %5, %18 : vector<4x256xf32>
    %20 = math.exp %19 : vector<4x256xf32>
    %cst_8 = arith.constant dense<0.000000e+00> : vector<256xf32>
    %21 = vector.multi_reduction <add>, %20, %cst_8 [0] : vector<4x256xf32> to vector<256xf32>
    %22 = vector.shape_cast %21 : vector<256xf32> to vector<1x256xf32>
    %23 = math.log %22 : vector<1x256xf32>
    %24 = arith.addf %17, %23 : vector<1x256xf32>
    %25 = vector.broadcast %15 : vector<1x256xi32> to vector<4x256xi32>
    %26 = arith.cmpi eq, %3, %25 : vector<4x256xi32>
    %cst_9 = arith.constant 0.000000e+00 : f32
    %27 = vector.broadcast %cst_9 : f32 to vector<4x256xf32>
    %28 = arith.select %26, %5, %27 : vector<4x256xi1>, vector<4x256xf32>
    %cst_10 = arith.constant dense<0.000000e+00> : vector<256xf32>
    %29 = vector.multi_reduction <add>, %28, %cst_10 [0] : vector<4x256xf32> to vector<256xf32>
    %30 = vector.shape_cast %29 : vector<256xf32> to vector<1x256xf32>
    %31 = arith.subf %24, %30 : vector<1x256xf32>
    %c0_11 = arith.constant 0 : index
    %c0_12 = arith.constant 0 : index
    %c0_13 = arith.constant 0 : index
    %32 = vector.load %arg4[%c0_11, %c0_12, %c0_13] : memref<1x1x256xf32, #tpu.memory_space<vmem>>, vector<1x1x256xf32>
    %33 = vector.shape_cast %31 : vector<1x256xf32> to vector<1x1x256xf32>
    %34 = arith.addf %32, %33 : vector<1x1x256xf32>
    %c0_14 = arith.constant 0 : index
    %c0_15 = arith.constant 0 : index
    %c0_16 = arith.constant 0 : index
    %35 = vector.load %arg4[%c0_14, %c0_15, %c0_16] : memref<1x1x256xf32, #tpu.memory_space<vmem>>, vector<1x1x256xf32>
    tpu.vector_store %arg4[%c0_14, %c0_15, %c0_16], %34 {strides = array<i32>} : memref<1x1x256xf32, #tpu.memory_space<vmem>>, vector<1x1x256xf32>,
    return
  }
  func.func @transform_0(%arg0: i32, %arg1: i32) -> (i32, i32, i32) {
    %c0_i32 = arith.constant 0 : i32
    %c0_i32_0 = arith.constant 0 : i32
    return %arg0, %c0_i32, %arg1 : i32, i32, i32
  }
  func.func @transform_1(%arg0: i32, %arg1: i32) -> (i32, i32, i32) {
    %c0_i32 = arith.constant 0 : i32
    %c0_i32_0 = arith.constant 0 : i32
    return %arg0, %c0_i32, %arg1 : i32, i32, i32
  }
  func.func @transform_2(%arg0: i32, %arg1: i32) -> (i32, i32, i32) {
    %c0_i32 = arith.constant 0 : i32
    %c0_i32_0 = arith.constant 0 : i32
    %c0_i32_1 = arith.constant 0 : i32
    return %arg0, %c0_i32, %c0_i32_0 : i32, i32, i32
  }
}

</mosaic_0001>

<bundles_post_ra>
// kernel: tpu_custom_call.1
= control target key start
LH: loop header
LB: loop body
LE: loop exit
PB: predicated region body
PF: predicated region fallthrough
CT: control target
= control target key end

     0   :  { %7 = vsyncpa [#allocation3], 0  ;;  %s1039_s0 = inlined_call_operand.hbm [shape: f32[2,4,256], index: 0, kind: input, shape index: {}]   ;;  %s1040_s1 = inlined_call_operand.hbm [shape: f32[2,4,256], index: 1, kind: input, shape index: {}]   ;;  %s1041_s2 = inlined_call_operand.hbm [shape: f32[2,1,256], index: 2, kind: output, shape index: {}]  }
   0x1   :  { %9 = vsyncpa [#allocation3 + $0x1], 0 }
   0x2   :  { %10 = vsyncpa [#allocation6], 0 }
   0x3   :  { %12 = vsyncpa [#allocation6 + $0x1], 0 }
   0x4   :  { %13 = vsyncpa [#allocation4], 0 }
   0x5   :  { %15 = vsyncpa [#allocation4 + $0x1], 0  ;;  %s768_s9 = smov 0   ;;  %s770_s10 = smov 0  }
   0x6   :  { %s772_s11 = smov 0   ;;  %s774_s12 = smov 0  }
   0x7   :  { %s776_s13 = smov 0   ;;  %s778_s14 = smov 0  }
   0x8 LB: > { %s499_s15 = sadd.s32 4294967295, %s745_s14   ;;  %s500_s16 = sadd.s32 4294967294, %s745_s14   ;;  %s745_s14 = sphi %s778_s14, %s21_s14   ;;  %s741_s13 = sphi %s776_s13, %s1063_s13   ;;  %s737_s12 = sphi %s774_s12, %s1062_s12   ;;  %s733_s11 = sphi %s772_s11, %s1061_s11   ;;  %s729_s10 = sphi %s770_s10, %s1060_s10   ;;  %s725_s9 = sphi %s768_s9, %s1059_s9  }
   0x9   : > { %s33_s17 = sadd.s32 1, %s741_s13  ;;  %s42_s18 = sadd.s32 1, %s733_s11 }
   0xa   : > { %p35_p0 = scmp.ge.s32.totalorder %s33_s17, 2  ;;  %p49_p1 = scmp.ne.s32.totalorder %s733_s11, %s729_s10 }
   0xb   : > { %p50_p2 = scmp.eq.s32.totalorder %s745_s14, 0  ;;  %p55_p3 = scmp.ne.s32.totalorder %s729_s10, %s725_s9 }
   0xc   : > { %s1065_s17 = smov (%p35_p0, %s33_s17), 0  ;;  %p56_p5 = scmp.eq.s32.totalorder %s499_s15, 0 }
   0xd   : > { %p809_p4 = por %p50_p2, %p49_p1  ;;  %s37_s20 = ssub.s32 %s741_s13, %s1065_s17 }
   0xe   : > { %p107_p6 = scmp.eq.s32.totalorder %s499_s15, 1  ;;  %p40_p7 = scmp.eq.s32.totalorder %s37_s20, 0 }
   0xf   : > { %p815_p8 = por %p56_p5, %p55_p3  ;;  %p113_p10 = scmp.eq.s32.totalorder %s500_s16, 1 }
  0x10   : > { %p819_p9 = por %p107_p6, %p49_p1  ;;  %p538_p13 = scmp.lt.s32.totalorder %s745_s14, 2 }
  0x11   : > { %s1045_s21 = scalar_select %p815_p8, 1, 0 }
  0x12   : > { %s1046_s22 = scalar_select %p819_p9, 1, 0 }
  0x13   : > { %s824_s23 = scalar_select %p40_p7, %s733_s11, %s42_s18  }
  0x14   : > { %p826_p11 = por %p113_p10, %p55_p3  ;;  %s833_s25 = sand.u32 1, %s733_s11  }
  0x15   : > { %s503_s26 = sshll.u32 %s833_s25, 3  ;;  %s518_s27 = sshll.u32 %s741_s13, 7 }
  0x16   : > { %s1047_s24 = scalar_select %p826_p11, 1, 0 }
  0x17   : > { %s842_s30 = scalar_lea.hbm %s1039_s0, %s518_s27  ;;  %s137_s3 = scalar_lea.vmem [#allocation2], %s503_s26 }
  0x18   : > { %s147_s4 = sshll.u32 %s137_s3, 4  ;;  %p850_p0 = pnand %p538_p13, %p809_p4  ;;  %s846_s4 = int_to_ptr.vmem [resolvable:$true] %s147_s4 }
  0x19   : > { %s134_s6 = scalar_lea.sflag [#allocation3], %s833_s25  ;;  %s599_s7 = scalar_lea.hbm %s842_s30, 128 }
  0x1a   : > { %p600_p3 = scmp.ne.s32.totalorder %s842_s30, %s599_s7  ;;  %p601_p5 = pneg %p850_p0 }
  0x1b   : > { %s604_s16 = scalar_lea.hbm %s1039_s0, 256  ;;  %p605_p4 = scmp.lt.u32.totalorder %s842_s30, %s1039_s0 }
  0x1c   : > { %p602_p6 = pnand %p601_p5, %p600_p3  ;;  %p606_p10 = scmp.lt.u32.totalorder %s604_s16, %s599_s7 }
  0x1d   : > { %p608_p12 = scmp.lt.u32.totalorder %s599_s7, %s842_s30 }
  0x1e   : > { %p603_p7 = pneg %p602_p6  ;;  %p607_p13 = por %p606_p10, %p605_p4 }
  0x20   : > { %p609_p1 = por %p608_p12, %p607_p13 }
  0x22   : > { %p610_p2 = pnand %p609_p1, %p603_p7 }
  0x24   : > { %613 = shalt.err (!%p610_p2)
}
  0x25   : > { %s614_s20 = scalar_lea.vmem %s846_s4, 128  ;;  %s747_s28 = smov [#allocation2]  }
  0x26   : > { %p615_p3 = scmp.ne.s32.totalorder %s846_s4, %s614_s20  ;;  %s619_s29 = sshll.u32 %s747_s28, 4  ;;  %s620_s29 = int_to_ptr.vmem [resolvable:$false] %s619_s29 }
  0x27   : > { %s621_s3 = scalar_lea.vmem %s620_s29, 256  ;;  %p622_p9 = scmp.lt.s32.totalorder %s846_s4, %s620_s29 }
  0x28   : > { %p617_p6 = pnand %p615_p3, %p601_p5  ;;  %p623_p4 = scmp.lt.s32.totalorder %s621_s3, %s614_s20 }
  0x2a   : > { %p618_p11 = pneg %p617_p6  ;;  %p624_p10 = por %p623_p4, %p622_p9 }
  0x2c   : > { %p625_p12 = pnand %p624_p10, %p618_p11 }
  0x2e   : > { %628 = shalt.err (!%p625_p12)
}
  0x2f   : > { %530 = dma.hbm_to_vmem [thread:$0]  (!%p850_p0), %s842_s30, 128, %s846_s4, %s134_s6  }
  0x30   : > { %p1049_p1 = scmp.lt.s32.totalorder %s745_s14, 3  ;;  %p1050_p2 = scmp.ge.s32.totalorder %s745_s14, 1 }
  0x31   : > { %s895_s16 = scalar_lea.hbm %s1040_s1, %s518_s27  ;;  %s158_s18 = scalar_lea.vmem [#allocation5], %s503_s26 }
  0x32   : > { %p886_p7 = pnand %p1050_p2, %p1049_p1  ;;  %s168_s19 = sshll.u32 %s158_s18, 4  ;;  %s169_s19 = int_to_ptr.vmem [resolvable:$true] %s168_s19 }
  0x33   : > { %s155_s30 = scalar_lea.sflag [#allocation6], %s833_s25  ;;  %s629_s4 = scalar_lea.hbm %s895_s16, 128 }
  0x34   : > { %s1051_s7 = scalar_select %p886_p7, 1, 0 }
  0x35   : > { %p630_p9 = scmp.ne.s32.totalorder %s895_s16, %s629_s4  ;;  %s634_s27 = scalar_lea.hbm %s1040_s1, 256 }
  0x36   : > { %p635_p3 = scmp.lt.u32.totalorder %s895_s16, %s1040_s1  ;;  %p636_p6 = scmp.lt.u32.totalorder %s634_s27, %s629_s4 }
  0x37   : > { %p632_p11 = pnand %p630_p9, %p601_p5  ;;  %p638_p10 = scmp.lt.u32.totalorder %s629_s4, %s895_s16 }
  0x38   : > { %p637_p4 = por %p636_p6, %p635_p3 }
  0x39   : > { %p633_p13 = pneg %p632_p11 }
  0x3a   : > { %p639_p12 = por %p638_p10, %p637_p4 }
  0x3c   : > { %p640_p1 = pnand %p639_p12, %p633_p13 }
  0x3e   : > { %643 = shalt.err (!%p640_p1)
}
  0x3f   : > { %s644_s25 = scalar_lea.vmem %s169_s19, 128  ;;  %s748_s26 = smov [#allocation5]  }
  0x40   : > { %p645_p2 = scmp.ne.s32.totalorder %s169_s19, %s644_s25  ;;  %s649_s3 = sshll.u32 %s748_s26, 4  ;;  %s650_s3 = int_to_ptr.vmem [resolvable:$false] %s649_s3 }
  0x41   : > { %s651_s8 = scalar_lea.vmem %s650_s3, 256  ;;  %p652_p8 = scmp.lt.s32.totalorder %s169_s19, %s650_s3 }
  0x42   : > { %p647_p9 = pnand %p645_p2, %p601_p5  ;;  %p653_p7 = scmp.lt.s32.totalorder %s651_s8, %s644_s25 }
  0x44   : > { %p648_p11 = pneg %p647_p9  ;;  %p654_p3 = por %p653_p7, %p652_p8 }
  0x46   : > { %p655_p6 = pnand %p654_p3, %p648_p11 }
  0x48   : > { %658 = shalt.err (!%p655_p6)
}
  0x49   : > { %533 = dma.hbm_to_vmem [thread:$0]  (!%p850_p0), %s895_s16, 128, %s169_s19, %s155_s30  }
  0x4a   : > { %p1052_p13 = scmp.ne.s32.totalorder %s1051_s7, 0 }
  0x4b   : > { %s922_s15 = sand.u32 (!%p1052_p13), 1, %s729_s10   ;;  %p1053_p5 = scmp.ne.s32.totalorder (!%p1052_p13), %s1045_s21, 0 }
  0x4c   : > { %177 = sbr.rel (%p1052_p13) target bundleno = 173 (0xad), region = 28  ;;  %s510_s18 = sshll.u32 (!%p1052_p13), %s922_s15, 3 }
  0x4d   : > { %s180_s4 = scalar_lea.sflag (!%p1052_p13), [#allocation3], %s922_s15  ;;  %s183_s6 = scalar_lea.vmem (!%p1052_p13), [#allocation2], %s510_s18 }
  0x53   : > { %712 = dma.done.wait (%p1053_p5), %s180_s4, 128  }
  0x54   : > { %714 = vsyncadd (%p1053_p5), %s180_s4, 4294967168  ;;  %s189_s5 = scalar_lea.sflag [#allocation6], %s922_s15  ;;  %s192_s16 = scalar_lea.vmem [#allocation5], %s510_s18 }
  0x55   : > { %716 = dma.done.wait (%p1053_p5), %s189_s5, 128  }
  0x56   : > { %718 = vsyncadd (%p1053_p5), %s189_s5, 4294967168  ;;  %s512_s7 = sshll.u32 %s922_s15, 1  ;;  %v224_v0 = vlaneseq  ;;  %v749_v2 = vmov 0.0   ;;  %vm236_vm1 = vcmask 1043456   ;;  %v945_v3 = vld [vmem:[%s183_s6] sm:$0xff]  ;;  %v232_v4 = vld [vmem:[%s192_s16] sm:$0xff] }
  0x57   : > { %s940_s19 = scalar_lea.vmem [#allocation7], %s512_s7  ;;  %v234_v5 = vcombine.high %v232_v4, %v232_v4  ;;  %v237_v6 = vsel %vm236_vm1, %v232_v4, -inf  ;;  %v950_v7 = vcombine.high %v945_v3, %v945_v3  ;;  %v288_v8 = vsel %vm236_vm1, %v945_v3, -inf  ;;  %s520_s21 = sshll.u32 %s737_s12, 5 }
  0x58   : > { %vm936_vm0 = vcmp.lt.s32.totalorder %v224_v0, 256  ;;  %v238_v9 = vrot.slane %v237_v6, 4  ;;  %v289_v10 = vrot.slane %v288_v8, 4  ;;  %v750_v12 = vmov 839922192   ;;  %s392_s30 = sshll.u32 %s940_s19, 4  ;;  %s987_s28 = scalar_lea.hbm %s1041_s2, %s520_s21  ;;  %s989_s30 = int_to_ptr.vmem [resolvable:$true] %s392_s30 }
  0x59   : > { %228 = vst.msk [vmem:[%s940_s19] sm:$0x3] %vm936_vm0, %v749_v2  ;;  %v244_v11 = vsel %vm236_vm1, %v234_v5, -inf  ;;  %v257_v13 = vunpack.c.l.s4 %v750_v12  ;;  %v295_v14 = vsel %vm236_vm1, %v950_v7, -inf  ;;  %v957_v23 = vshrl.u32 %v224_v0, 7  ;;  %s378_s29 = scalar_lea.sflag [#allocation4], %s922_s15 }
  0x5a   : > { %v239_v15 = vmax.f32 %v237_v6, %v238_v9  ;;  %v245_v16 = vrot.slane %v244_v11, 4  ;;  %v290_v17 = vmax.f32 %v288_v8, %v289_v10  ;;  %v296_v18 = vrot.slane %v295_v14, 4  ;;  %s659_s25 = scalar_lea.vmem %s989_s30, 32  ;;  %p1056_p0 = scmp.ne.s32.totalorder %s1046_s22, 0 }
  0x5b   : > { %v258_v24 = vunpack.c.0.s8 %v257_v13  ;;  %p660_p8 = scmp.ne.s32.totalorder %s989_s30, %s659_s25  ;;  %s752_s12 = smov [#allocation7]  }
  0x5c   : > { %v240_v19 = vrot.slane %v239_v15, 2  ;;  %v246_v20 = vmax.f32 %v244_v11, %v245_v16  ;;  %v291_v21 = vrot.slane %v290_v17, 2  ;;  %v297_v22 = vmax.f32 %v295_v14, %v296_v18  ;;  %s663_s26 = sshll.u32 %s752_s12, 4  ;;  %s664_s26 = int_to_ptr.vmem [resolvable:$false] %s663_s26 }
  0x5d   : > { %v261_v33 = vsub.s32 %v258_v24, %v957_v23  ;;  %p661_p7 = pnand %p660_p8, %p1056_p0  ;;  %s665_s3 = scalar_lea.vmem %s664_s26, 64 }
  0x5e   : > { %v241_v25 = vmax.f32 %v239_v15, %v240_v19  ;;  %v247_v26 = vrot.slane %v246_v20, 2  ;;  %v292_v27 = vmax.f32 %v290_v17, %v291_v21  ;;  %v298_v28 = vrot.slane %v297_v22, 2  ;;  %p666_p10 = scmp.lt.s32.totalorder %s989_s30, %s664_s26  ;;  %p667_p12 = scmp.lt.s32.totalorder %s665_s3, %s659_s25 }
  0x5f   : > { %v262_v40 = vrot.slane %v957_v23, %v261_v33  ;;  %p662_p4 = pneg %p661_p7 }
  0x60   : > { %v242_v29 = vrot.slane %v241_v25, 1  ;;  %v248_v30 = vmax.f32 %v246_v20, %v247_v26  ;;  %v293_v31 = vrot.slane %v292_v27, 1  ;;  %v299_v32 = vmax.f32 %v297_v22, %v298_v28  ;;  %p668_p1 = por %p667_p12, %p666_p10 }
  0x62   : > { %v243_v34 = vmax.f32 %v241_v25, %v242_v29  ;;  %v249_v35 = vrot.slane %v248_v30, 1  ;;  %v960_v36 = vmax.f32 %v292_v27, %v293_v31  ;;  %v300_v37 = vrot.slane %v299_v32, 1  ;;  %p669_p2 = pnand %p668_p1, %p662_p4 }
  0x63   : > { %v751_v29 = vmov 1966171168  }
  0x64   : > { %v250_v38 = vmax.f32 %v248_v30, %v249_v35  ;;  %v962_v39 = vmax.f32 %v299_v32, %v300_v37  ;;  %v357_v30 = vunpack.c.l.s4 %v751_v29 }
  0x66   : > { %v253_v41 = vcombine.low %v243_v34, %v250_v38  ;;  %v304_v42 = vcombine.low %v960_v36, %v962_v39 }
  0x68   : > { %vm255_vm2 = vcmp.eq.f32.partialorder %v232_v4, %v253_v41  ;;  %v306_v43 = vsub.f32 %v945_v3, %v304_v42 }
  0x69   : > { %v263_v44 = vsel %vm255_vm2, %v262_v40, 4  ;;  %v358_v40 = vunpack.c.0.s8 %v357_v30 }
  0x6a   : > { %v264_v45 = vcombine.high %v263_v44, %v263_v44  ;;  %v265_v46 = vsel %vm236_vm1, %v263_v44, 2147483647  ;;  %v307_v47 = vmul.f32 1.442695, %v306_v43 }
  0x6b   : > { %v266_v48 = vrot.slane %v265_v46, 4  ;;  %v361_v44 = vsub.s32 %v358_v40, %v957_v23 }
  0x6c   : > { %v275_v49 = vsel %vm236_vm1, %v264_v45, 2147483647  ;;  %593 = vpow2.f32 %v307_v47  ;;  %v352_v47 = vld [vmem:[%s940_s19] sm:$0x3] }
  0x6d   : > { %vm267_vm3 = vcmp.lt.s32.totalorder %v265_v46, %v266_v48  ;;  %v276_v50 = vrot.slane %v275_v49, 4 }
  0x6e   : > { %v268_v51 = vsel %vm267_vm3, %v265_v46, %v266_v48 }
  0x6f   : > { %v269_v52 = vrot.slane %v268_v51, 2  ;;  %vm277_vm4 = vcmp.lt.s32.totalorder %v275_v49, %v276_v50 }
  0x70   : > { %v278_v53 = vsel %vm277_vm4, %v275_v49, %v276_v50 }
  0x71   : > { %vm270_vm5 = vcmp.lt.s32.totalorder %v268_v51, %v269_v52  ;;  %v279_v54 = vrot.slane %v278_v53, 2 }
  0x72   : > { %v271_v55 = vsel %vm270_vm5, %v268_v51, %v269_v52 }
  0x73   : > { %v272_v56 = vrot.slane %v271_v55, 1  ;;  %vm280_vm6 = vcmp.lt.s32.totalorder %v278_v53, %v279_v54 }
  0x74   : > { %v281_v57 = vsel %vm280_vm6, %v278_v53, %v279_v54 }
  0x75   : > { %vm273_vm7 = vcmp.lt.s32.totalorder %v271_v55, %v272_v56  ;;  %v282_v58 = vrot.slane %v281_v57, 1 }
  0x76   : > { %v594_v59 = vpop.eup %593  ;;  %v274_v60 = vsel %vm273_vm7, %v271_v55, %v272_v56 }
  0x77   : > { %vm283_vm8 = vcmp.lt.s32.totalorder %v281_v57, %v282_v58  ;;  %v310_v61 = vcombine.high %v594_v59, %v594_v59  ;;  %v312_v62 = vsel %vm236_vm1, %v594_v59, 0.0  ;;  %vm332_vm9 = vcmp.eq.s32.totalorder %v957_v23, %v274_v60 }
  0x78   : > { %v284_v63 = vsel %vm283_vm8, %v281_v57, %v282_v58  ;;  %v313_v0 = vrot.slane %v312_v62, 4  ;;  %v334_v2 = vsel %vm332_vm9, %v945_v3, 0.0 }
  0x79   : > { %v319_v4 = vsel %vm236_vm1, %v310_v61, 0.0  ;;  %vm333_vm10 = vcmp.eq.s32.totalorder %v957_v23, %v284_v63  ;;  %v336_v5 = vsel %vm236_vm1, %v334_v2, 0.0 }
  0x7a   : > { %v314_v6 = vadd.f32 %v313_v0, %v312_v62  ;;  %v320_v8 = vrot.slane %v319_v4, 4  ;;  %v335_v9 = vsel %vm333_vm10, %v950_v7, 0.0  ;;  %v337_v10 = vrot.slane %v336_v5, 4 }
  0x7b   : > { %v343_v11 = vsel %vm236_vm1, %v335_v9, 0.0 }
  0x7c   : > { %v315_v12 = vrot.slane %v314_v6, 2  ;;  %v321_v13 = vadd.f32 %v320_v8, %v319_v4  ;;  %v344_v14 = vrot.slane %v343_v11, 4  ;;  %v338_v17 = vadd.f32 %v337_v10, %v336_v5 }
  0x7e   : > { %v316_v15 = vadd.f32 %v315_v12, %v314_v6  ;;  %v322_v16 = vrot.slane %v321_v13, 2  ;;  %v345_v19 = vadd.f32 %v344_v14, %v343_v11  ;;  %v339_v22 = vrot.slane %v338_v17, 2 }
  0x80   : > { %v317_v3 = vrot.slane %v316_v15, 1  ;;  %v323_v18 = vadd.f32 %v322_v16, %v321_v13  ;;  %v346_v25 = vrot.slane %v345_v19, 2  ;;  %v340_v7 = vadd.f32 %v339_v22, %v338_v17 }
  0x82   : > { %v318_v20 = vadd.f32 %v317_v3, %v316_v15  ;;  %v324_v21 = vrot.slane %v323_v18, 1  ;;  %v347_v26 = vadd.f32 %v346_v25, %v345_v19  ;;  %v341_v27 = vrot.slane %v340_v7, 1 }
  0x84   : > { %v325_v24 = vadd.f32 %v324_v21, %v323_v18  ;;  %595 = vlog2.f32 %v318_v20  ;;  %v348_v28 = vrot.slane %v347_v26, 1  ;;  %v342_v33 = vadd.f32 %v341_v27, %v340_v7 }
  0x86   : > { %597 = vlog2.f32 %v325_v24  ;;  %v349_v38 = vadd.f32 %v348_v28, %v347_v26 }
  0x8e   : > { %v596_v31 = vpop.eup %595 }
  0x8f   : > { %v327_v32 = vmul.f32 0.6931472, %v596_v31 }
  0x90   : > { %v598_v34 = vpop.eup %597 }
  0x91   : > { %v329_v35 = vmul.f32 0.6931472, %v598_v34  ;;  %v330_v37 = vadd.f32 %v327_v32, %v960_v36 }
  0x93   : > { %v331_v41 = vadd.f32 %v329_v35, %v962_v39  ;;  %v350_v42 = vsub.f32 %v330_v37, %v342_v33 }
  0x95   : > { %v351_v43 = vsub.f32 %v331_v41, %v349_v38 }
  0x97   : > { %v355_v45 = vcombine.low %v350_v42, %v351_v43 }
  0x99   : > { %v362_v46 = vrot.slane %v355_v45, %v361_v44 }
  0x9b   : > { %v369_v48 = vrot.slane %v362_v46, %v361_v44 }
  0x9d   : > { %v371_v49 = vadd.f32 %v369_v48, %v352_v47 }
  0x9f   : > { %376 = vst.msk [vmem:[%s940_s19] sm:$0x3] %vm936_vm0, %v371_v49 }
  0xa0   : > { %672 = shalt.err (!%p669_p2)
}
  0xa1   : > { %s673_s8 = scalar_lea.hbm %s987_s28, 32  ;;  %s677_s4 = scalar_lea.hbm %s1041_s2, 64 }
  0xa2   : > { %p674_p9 = scmp.ne.s32.totalorder %s987_s28, %s673_s8  ;;  %p678_p6 = scmp.lt.u32.totalorder %s987_s28, %s1041_s2 }
  0xa3   : > { %p679_p13 = scmp.lt.u32.totalorder %s677_s4, %s673_s8  ;;  %p681_p8 = scmp.lt.u32.totalorder %s673_s8, %s987_s28 }
  0xa4   : > { %p675_p11 = pnand %p674_p9, %p1056_p0 }
  0xa5   : > { %p680_p5 = por %p679_p13, %p678_p6 }
  0xa6   : > { %p676_p3 = pneg %p675_p11 }
  0xa7   : > { %p682_p7 = por %p681_p8, %p680_p5 }
  0xa9   : > { %p683_p4 = pnand %p682_p7, %p676_p3 }
  0xab   : > { %686 = shalt.err (!%p683_p4)
}
  0xac   : > { %525 = dma.vmem_to_hbm [thread:$0]  (%p1056_p0), %s989_s30, 32, %s987_s28, %s378_s29  }
  0xad PF: > { %s404_s16 = sand.u32 1, %s725_s9   ;;  %p1057_p10 = scmp.ne.s32.totalorder %s1047_s24, 0 }
  0xae   : > { %p1058_p12 = scmp.ge.s32.totalorder %s745_s14, 2  ;;  %s405_s7 = scalar_lea.sflag [#allocation4], %s404_s16 }
  0xb0   : > { %p535_p1 = pnand %p1058_p12, %p1057_p10 }
  0xb2   : > { %720 = dma.done.wait (!%p535_p1), %s405_s7, 32  }
  0xb3   : > { %722 = vsyncadd (!%p535_p1), %s405_s7, 4294967264  ;;  %s21_s14 = sadd.s32 1, %s745_s14   ;;  %s1059_s9 = smov %s729_s10 }
  0xb4   : > { %p18_p2 = scmp.ge.s32.totalorder %s21_s14, 4   ;;  %s1060_s10 = smov %s733_s11 }
  0xb5   : > { %s1061_s11 = smov %s824_s23  ;;  %s1062_s12 = smov %s741_s13 }
  0xb6   : > { %s1063_s13 = smov %s1065_s17  ;;  %20 = sbr.rel (!%p18_p2) target bundleno = 8 (0x8), region = 90 }
  0xbd   :  { %410 = vsyncpa [#allocation3], 1 }
  0xbe   :  { %412 = vsyncpa [#allocation3 + $0x1], 1 }
  0xbf   :  { %413 = vsyncpa [#allocation6], 1 }
  0xc0   :  { %415 = vsyncpa [#allocation6 + $0x1], 1 }
  0xc1   :  { %416 = vsyncpa [#allocation4], 1 }
  0xc2   :  { %418 = vsyncpa [#allocation4 + $0x1], 1 }

</bundles_post_ra>
